<compile_context>
chip_gen: v5e
topology: v5e:2x2
jax: 0.10.0
libtpu: 0.0.40
codegen_flags: <defaults>
</compile_context>

<pallas_src>
import jax
import jax.numpy as jnp
from jax import lax
from jax.experimental import pallas as pl
from jax.experimental.pallas import tpu as pltpu

_SELU_ALPHA = 1.6732632423543772
_SELU_SCALE = 1.0507009873554805


def _selu(x):
    neg = _SELU_ALPHA * (jnp.exp(jnp.minimum(x, 0.0)) - 1.0)
    return _SELU_SCALE * jnp.where(x > 0, x, neg)


def _fused_block_kernel(x_ref, w1_ref, w2_ref, o_ref, h_ref):
    """o = selu(selu(x @ w1) @ w2_toeplitz[:, col_tile]); intermediate stays in VMEM."""
    # Stage 1: bf16 MXU matmul, f32 accumulate, SELU, stash bf16 activation in VMEM scratch.
    acc1 = jnp.dot(x_ref[...], w1_ref[...], preferred_element_type=jnp.float32)
    h_ref[...] = _selu(acc1).astype(h_ref.dtype)
    # Stage 2: bf16 MXU matmul against the resident Toeplitz column slab, SELU, lane-dense store.
    acc2 = jnp.dot(h_ref[...], w2_ref[...], preferred_element_type=jnp.float32)
    o_ref[...] = _selu(acc2).astype(o_ref.dtype)


def _block_toeplitz_w2(w2, H, W):
    """Fold a 3x3 / stride-1 / pad-1 Conv2d weight into a (Fin*H*W, Fout*H*W) matrix.

    Row order (c, p, q) matches flattening of the conv1 output (F, H, W); column order
    (o, i, j) makes the matmul output reshape directly to (N, Fout, H, W).
    """
    fout, fin, kh, kw = w2.shape
    p = jnp.arange(H)
    i = jnp.arange(H)
    a = jnp.arange(kh)
    th = (p[:, None, None] == (i[None, :, None] + a[None, None, :] - 1)).astype(w2.dtype)
    q = jnp.arange(W)
    j = jnp.arange(W)
    b = jnp.arange(kw)
    tw = (q[:, None, None] == (j[None, :, None] + b[None, None, :] - 1)).astype(w2.dtype)
    toe = jnp.einsum("ocab,pia,qjb->cpqoij", w2, th, tw)
    return toe.reshape(fin * H * W, fout * H * W)


def prepare_first_hdcgan_block_weights(w1, w2):
    """One-time (per weight update) host prep: flatten conv1, Toeplitz-fold conv2, cast bf16."""
    cin, f, kh, kw = w1.shape
    w1_flat = w1.reshape(cin, f * kh * kw).astype(jnp.bfloat16)
    w2_toe = _block_toeplitz_w2(w2, kh, kw).astype(jnp.bfloat16)
    return w1_flat, w2_toe


def _round_up(a, b):
    return ((a + b - 1) // b) * b


def _pick_col_tile(k1, k2o):
    """Largest multiple-of-128 divisor of k2o whose bf16 (k1, tn) slab is <= ~8 MiB."""
    if k2o % 128 != 0:
        return k2o  # tiny / odd filter counts: keep one full lane-dense tile
    budget_cols = max(128, (((8 << 20) // (2 * k1)) // 128) * 128)
    if k2o <= budget_cols:
        return k2o
    tn, t = 128, 256
    while t <= budget_cols:
        if k2o % t == 0:
            tn = t
        t += 128
    return tn


def first_hdcgan_block_apply(x, w1_flat, w2_toe, out_hw=(4, 4)):
    """Forward pass given prepared (bf16) weights.

    x       : (N, noise_size, 1, 1) float32, NCHW
    w1_flat : (noise_size, F*H*W)   bfloat16
    w2_toe  : (F*H*W, Fout*H*W)     bfloat16 block-Toeplitz conv2 weight
    returns (N, Fout, H, W) float32, NCHW
    """
    n, cin, hin, win = x.shape
    assert hin == 1 and win == 1, "first GAN block expects a 1x1 latent"
    cin_w, k1 = w1_flat.shape
    assert cin_w == cin
    k1_w, k2o = w2_toe.shape
    assert k1_w == k1
    H, W = out_hw
    fout = k2o // (H * W)

    x_flat = x.reshape(n, cin).astype(jnp.bfloat16)

    # Column (N) tiling of the Toeplitz matmul: bounds VMEM and adds a 2nd parallel axis.
    tn = _pick_col_tile(k1, k2o)
    n_j = k2o // tn

    # Balanced batch tiling (avoid pathological padding); tm capped at 512, multiple of 8.
    m8 = max(8, _round_up(n, 8))
    n_i = -(-m8 // 512)
    if n_i == 1 and n_j == 1 and m8 >= 16:
        n_i = 2  # v7x: keep both TensorCores busy on small-batch generator calls
    tm = _round_up(-(-m8 // n_i), 8)
    m_pad = tm * n_i
    if m_pad != n:
        x_flat = jnp.pad(x_flat, ((0, m_pad - n), (0, 0)))

    # Advisory cost (stage-1 work is recomputed once per column tile).
    flops = 2 * m_pad * cin * k1 * n_j + 2 * m_pad * k1 * k2o
    transcendentals = m_pad * k1 * n_j + m_pad * k2o
    bytes_accessed = 2 * (m_pad * cin + cin * k1 + k1 * k2o) + 4 * m_pad * k2o

    # Explicit VMEM budget: double-buffered inputs/output + bf16 activation scratch (+ slack).
    tile_bytes = (2 * tm * cin * 2 + 2 * cin * k1 * 2 + 2 * k1 * tn * 2
                  + 2 * tm * tn * 4 + tm * k1 * 2)
    vmem_limit = int(min(60 << 20, max(32 << 20, 2 * tile_bytes + (8 << 20))))

    out_flat = pl.pallas_call(
        _fused_block_kernel,
        out_shape=jax.ShapeDtypeStruct((m_pad, k2o), jnp.float32),
        grid_spec=pltpu.PrefetchScalarGridSpec(
            num_scalar_prefetch=0,
            grid=(n_i, n_j),
            in_specs=[
                pl.BlockSpec((tm, cin), lambda i, j: (i, 0)),
                pl.BlockSpec((cin, k1), lambda i, j: (0, 0)),
                pl.BlockSpec((k1, tn), lambda i, j: (0, j)),
            ],
            out_specs=pl.BlockSpec((tm, tn), lambda i, j: (i, j)),
            scratch_shapes=[pltpu.VMEM((tm, k1), jnp.bfloat16)],
        ),
        compiler_params=pltpu.CompilerParams(
            dimension_semantics=("parallel", "parallel"),
            vmem_limit_bytes=vmem_limit,
        ),
        cost_estimate=pl.CostEstimate(
            flops=flops,
            transcendentals=transcendentals,
            bytes_accessed=bytes_accessed,
        ),
    )(x_flat, w1_flat, w2_toe)

    # Column order is (Fout, H, W): reshape is free, no transpose needed.
    return out_flat[:n].reshape(n, fout, H, W)


def first_hdcgan_block(x, w1, w2):
    """Convenience one-shot forward. Prefer prepare_* + apply so weight prep is hoisted."""
    kh, kw = w1.shape[2], w1.shape[3]
    w1_flat, w2_toe = prepare_first_hdcgan_block_weights(w1, w2)
    return first_hdcgan_block_apply(x, w1_flat, w2_toe, out_hw=(kh, kw))


def _reference(x, w1, w2):
    # Pure-JAX reference (high precision) for verification.
    r = jnp.einsum("nc,cfhw->nfhw", x[:, :, 0, 0], w1,
                   precision=lax.Precision.HIGHEST)
    r = jax.nn.selu(r)
    r = lax.conv_general_dilated(
        r, w2, window_strides=(1, 1), padding=((1, 1), (1, 1)),
        dimension_numbers=("NCHW", "OIHW", "NCHW"),
        precision=lax.Precision.HIGHEST,
    )
    return jax.nn.selu(r)


if __name__ == "__main__":
    noise_size = 64
    filters = 32
    batch = 2

    key = jax.random.PRNGKey(0)
    kx, kw1, kw2 = jax.random.split(key, 3)

    x = jax.random.normal(kx, (batch, noise_size, 1, 1), dtype=jnp.float32)
    w1 = jax.random.normal(kw1, (noise_size, filters, 4, 4), dtype=jnp.float32) * 0.05
    w2 = jax.random.normal(kw2, (filters, filters, 3, 3), dtype=jnp.float32) * 0.05

    # Weight prep is hoisted: done once per weight update, reused across forwards.
    w1_flat, w2_toe = prepare_first_hdcgan_block_weights(w1, w2)
    out = jax.block_until_ready(first_hdcgan_block_apply(x, w1_flat, w2_toe))
    ref = jax.block_until_ready(_reference(x, w1, w2))

    assert out.shape == (batch, filters, 4, 4), out.shape
    max_err = float(jnp.max(jnp.abs(out - ref)))
    ref_scale = float(jnp.max(jnp.abs(ref))) + 1e-6
    # bf16 MXU operands with f32 accumulation; compare relative to signal scale.
    assert max_err / ref_scale < 1e-2, f"mismatch vs reference: abs={max_err}, rel={max_err / ref_scale}"

    print("KERNEL_OK")
</pallas_src>

<mosaic_0001>
module attributes {stable_mosaic.version = 11 : i64} {
  func.func @_fused_block_kernel(%arg0: i32, %arg1: i32, %arg2: memref<8x64xbf16, #tpu.memory_space<vmem>>, %arg3: memref<64x512xbf16, #tpu.memory_space<vmem>>, %arg4: memref<512x512xbf16, #tpu.memory_space<vmem>>, %arg5: memref<8x512xf32, #tpu.memory_space<vmem>>, %arg6: memref<8x512xbf16, #tpu.memory_space<vmem>>) attributes {dimension_semantics = [#tpu.dimension_semantics<parallel>, #tpu.dimension_semantics<parallel>], iteration_bounds = array<i64: 1, 1>, scalar_prefetch = 0 : i64, scratch_operands = 1 : i64, tpu.core_type = #tpu.core_type<tc>, window_params = [{transform_indices = @transform_0, window_bounds = array<i64: 8, 64>}, {pipeline_mode = #tpu.pipeline_mode<synchronous>, transform_indices = @transform_1, window_bounds = array<i64: 64, 512>}, {transform_indices = @transform_2, window_bounds = array<i64: 512, 512>}, {transform_indices = @transform_3, window_bounds = array<i64: 8, 512>}]} {
    %c0 = arith.constant 0 : index
    %c0_0 = arith.constant 0 : index
    %0 = vector.load %arg2[%c0, %c0_0] : memref<8x64xbf16, #tpu.memory_space<vmem>>, vector<8x64xbf16>
    %c0_1 = arith.constant 0 : index
    %c0_2 = arith.constant 0 : index
    %1 = vector.load %arg3[%c0_1, %c0_2] : memref<64x512xbf16, #tpu.memory_space<vmem>>, vector<64x512xbf16>
    %cst = arith.constant dense<0.000000e+00> : vector<8x512xf32>
    %2 = tpu.matmul %0, %1, %cst {dimension_numbers = #tpu.dot_dimension_numbers<[1], [0], [0], [1], [0, 0, 1, 1], [], []>} : vector<8x64xbf16>, vector<64x512xbf16>, vector<8x512xf32> -> vector<8x512xf32>
    %cst_3 = arith.constant 0.000000e+00 : f32
    %3 = vector.broadcast %cst_3 : f32 to vector<8x512xf32>
    %4 = arith.minimumf %2, %3 : vector<8x512xf32>
    %5 = math.exp %4 : vector<8x512xf32>
    %cst_4 = arith.constant 1.000000e+00 : f32
    %6 = vector.broadcast %cst_4 : f32 to vector<8x512xf32>
    %7 = arith.subf %5, %6 : vector<8x512xf32>
    %cst_5 = arith.constant 1.67326319 : f32
    %8 = vector.broadcast %cst_5 : f32 to vector<8x512xf32>
    %9 = arith.mulf %8, %7 : vector<8x512xf32>
    %cst_6 = arith.constant 0.000000e+00 : f32
    %10 = vector.broadcast %cst_6 : f32 to vector<8x512xf32>
    %11 = arith.cmpf ogt, %2, %10 : vector<8x512xf32>
    %12 = arith.select %11, %2, %9 : vector<8x512xi1>, vector<8x512xf32>
    %cst_7 = arith.constant 1.05070102 : f32
    %13 = vector.broadcast %cst_7 : f32 to vector<8x512xf32>
    %14 = arith.mulf %13, %12 : vector<8x512xf32>
    %15 = arith.truncf %14 : vector<8x512xf32> to vector<8x512xbf16>
    %c0_8 = arith.constant 0 : index
    %c0_9 = arith.constant 0 : index
    %16 = vector.load %arg6[%c0_8, %c0_9] : memref<8x512xbf16, #tpu.memory_space<vmem>>, vector<8x512xbf16>
    tpu.vector_store %arg6[%c0_8, %c0_9], %15 {strides = array<i32>} : memref<8x512xbf16, #tpu.memory_space<vmem>>, vector<8x512xbf16>,
    %c0_10 = arith.constant 0 : index
    %c0_11 = arith.constant 0 : index
    %17 = vector.load %arg6[%c0_10, %c0_11] : memref<8x512xbf16, #tpu.memory_space<vmem>>, vector<8x512xbf16>
    %c0_12 = arith.constant 0 : index
    %c0_13 = arith.constant 0 : index
    %18 = vector.load %arg4[%c0_12, %c0_13] : memref<512x512xbf16, #tpu.memory_space<vmem>>, vector<512x512xbf16>
    %cst_14 = arith.constant dense<0.000000e+00> : vector<8x512xf32>
    %19 = tpu.matmul %17, %18, %cst_14 {dimension_numbers = #tpu.dot_dimension_numbers<[1], [0], [0], [1], [0, 0, 1, 1], [], []>} : vector<8x512xbf16>, vector<512x512xbf16>, vector<8x512xf32> -> vector<8x512xf32>
    %cst_15 = arith.constant 0.000000e+00 : f32
    %20 = vector.broadcast %cst_15 : f32 to vector<8x512xf32>
    %21 = arith.minimumf %19, %20 : vector<8x512xf32>
    %22 = math.exp %21 : vector<8x512xf32>
    %cst_16 = arith.constant 1.000000e+00 : f32
    %23 = vector.broadcast %cst_16 : f32 to vector<8x512xf32>
    %24 = arith.subf %22, %23 : vector<8x512xf32>
    %cst_17 = arith.constant 1.67326319 : f32
    %25 = vector.broadcast %cst_17 : f32 to vector<8x512xf32>
    %26 = arith.mulf %25, %24 : vector<8x512xf32>
    %cst_18 = arith.constant 0.000000e+00 : f32
    %27 = vector.broadcast %cst_18 : f32 to vector<8x512xf32>
    %28 = arith.cmpf ogt, %19, %27 : vector<8x512xf32>
    %29 = arith.select %28, %19, %26 : vector<8x512xi1>, vector<8x512xf32>
    %cst_19 = arith.constant 1.05070102 : f32
    %30 = vector.broadcast %cst_19 : f32 to vector<8x512xf32>
    %31 = arith.mulf %30, %29 : vector<8x512xf32>
    %c0_20 = arith.constant 0 : index
    %c0_21 = arith.constant 0 : index
    %32 = vector.load %arg5[%c0_20, %c0_21] : memref<8x512xf32, #tpu.memory_space<vmem>>, vector<8x512xf32>
    tpu.vector_store %arg5[%c0_20, %c0_21], %31 {strides = array<i32>} : memref<8x512xf32, #tpu.memory_space<vmem>>, vector<8x512xf32>,
    return
  }
  func.func @transform_0(%arg0: i32, %arg1: i32) -> (i32, i32) {
    %c0_i32 = arith.constant 0 : i32
    %c0_i32_0 = arith.constant 0 : i32
    return %arg0, %c0_i32 : i32, i32
  }
  func.func @transform_1(%arg0: i32, %arg1: i32) -> (i32, i32) {
    %c0_i32 = arith.constant 0 : i32
    %c0_i32_0 = arith.constant 0 : i32
    %c0_i32_1 = arith.constant 0 : i32
    return %c0_i32, %c0_i32_0 : i32, i32
  }
  func.func @transform_2(%arg0: i32, %arg1: i32) -> (i32, i32) {
    %c0_i32 = arith.constant 0 : i32
    %c0_i32_0 = arith.constant 0 : i32
    return %c0_i32, %arg1 : i32, i32
  }
  func.func @transform_3(%arg0: i32, %arg1: i32) -> (i32, i32) {
    %c0_i32 = arith.constant 0 : i32
    return %arg0, %arg1 : i32, i32
  }
}

</mosaic_0001>

<bundles_post_ra>
// kernel: tpu_custom_call.1
= control target key start
LH: loop header
LB: loop body
LE: loop exit
PB: predicated region body
PF: predicated region fallthrough
CT: control target
= control target key end

     0   :  { %8 = vsyncpa [#allocation4], 0  ;;  %s2218_s0 = inlined_call_operand.hbm [shape: bf16[8,64], index: 0, kind: input, shape index: {}]   ;;  %s2219_s1 = inlined_call_operand.hbm [shape: bf16[64,512], index: 1, kind: input, shape index: {}]   ;;  %s2220_s2 = inlined_call_operand.hbm [shape: bf16[512,512], index: 2, kind: input, shape index: {}]   ;;  %s2221_s3 = inlined_call_operand.hbm [shape: f32[8,512], index: 3, kind: output, shape index: {}]  }
   0x1   :  { %9 = vsyncpa [#allocation7], 0  ;;  %s26_s14 = sshll.u32 %s2219_s1, 4  ;;  %s27_s14 = int_to_ptr.hbm [resolvable:$true] %s26_s14 }
   0x2   :  { %10 = vsyncpa [#allocation5], 0  ;;  %s2152_s15 = smov [#allocation6]   ;;  %s16_s19 = sshll.u32 %s2218_s0, 4  ;;  %s17_s19 = int_to_ptr.hbm [resolvable:$true] %s16_s19 }
   0x3   :  { %s28_s16 = sshll.u32 %s2152_s15, 4  ;;  %s2153_s20 = smov 256   ;;  %s29_s16 = int_to_ptr.vmem [resolvable:$true] %s28_s16 }
   0x4   :  { %s2154_s21 = smov 16   ;;  %s2155_s22 = smov [#allocation3]  }
   0x5   :  { %34 = dma.hbm_to_vmem [thread:$0]  %s27_s14, 2048, %s29_s16, [#allocation7], %s2153_s20, %s2153_s20, %s2154_s21  }
   0x6   :  { %s18_s23 = sshll.u32 %s2155_s22, 4  ;;  %s39_s26 = sshll.u32 %s2220_s2, 4  ;;  %s19_s23 = int_to_ptr.vmem [resolvable:$true] %s18_s23  ;;  %s40_s26 = int_to_ptr.hbm [resolvable:$true] %s39_s26 }
   0x7   :  { %21 = dma.hbm_to_vmem [thread:$0]  %s17_s19, 64, %s19_s23, [#allocation4]  }
   0x8   :  { %s2156_s1 = smov [#allocation8]  }
   0x9   :  { %s41_s27 = sshll.u32 %s2156_s1, 4  ;;  %s42_s27 = int_to_ptr.vmem [resolvable:$true] %s41_s27 }
   0xa   :  { %47 = dma.hbm_to_vmem [thread:$0]  %s40_s26, 16384, %s42_s27, [#allocation7], %s2153_s20, %s2153_s20, %s2154_s21  }
   0xb   :  { %2146 = dma.done.wait [#allocation4], 64  }
   0xc   :  { %2147 = vsyncadd [#allocation4], 4294967232 }
   0xd   :  { %2148 = dma.done.wait [#allocation7], 18432  }
   0xe   :  { %2149 = vsyncadd [#allocation7], 4294948864  ;;  %v1346_v0 = vld [vmem:[#allocation6 + $0x60] sm:$0xf]  ;;  %v1898_v1 = vld [vmem:[#allocation6 + $0x6c] sm:$0xf0] }
   0xf   :  { %v1896_v2 = vld [vmem:[#allocation6 + $0x64] sm:$0xf]  ;;  %v1347_v3 = vor.u32 %v1898_v1, %v1346_v0  ;;  %v1348_v4 = vld [vmem:[#allocation6 + $0x70] sm:$0xf0]  ;;  %v1354_v5 = vld [vmem:[#allocation6 + $0x68] sm:$0xf] }
  0x10   :  { %v1899_v6 = vld [vmem:[#allocation6 + $0x74] sm:$0xf0]  ;;  %v1351_v7 = vor.u32 %v1896_v2, %v1348_v4  ;;  %v1897_v9 = vld [vmem:[#allocation6 + $0x6c] sm:$0xf]  ;;  %v1356_v10 = vld [vmem:[#allocation6 + $0x78] sm:$0xf0] }
  0x11   :  { %v1355_v8 = vor.u32 %v1899_v6, %v1354_v5  ;;  %v1330_v11 = vld [vmem:[#allocation6 + $0x40] sm:$0xf]  ;;  %166 = vmatpush.bf16.msra.mxu0 %v1347_v3  ;;  %v1359_v12 = vor.u32 %v1897_v9, %v1356_v10  ;;  %v1894_v13 = vld [vmem:[#allocation6 + $0x4c] sm:$0xf0]  ;;  %v1892_v14 = vld [vmem:[#allocation6 + $0x44] sm:$0xf] }
  0x12   :  { %v1332_v15 = vld [vmem:[#allocation6 + $0x50] sm:$0xf0]  ;;  %179 = vmatpush.bf16.msra.mxu1 %v1351_v7  ;;  %v1331_v16 = vor.u32 %v1894_v13, %v1330_v11  ;;  %v1338_v18 = vld [vmem:[#allocation6 + $0x48] sm:$0xf]  ;;  %v1895_v19 = vld [vmem:[#allocation6 + $0x54] sm:$0xf0] }
  0x13   :  { %192 = vmatpush.bf16.msra.mxu2 %v1355_v8  ;;  %v1335_v17 = vor.u32 %v1892_v14, %v1332_v15  ;;  %v1893_v20 = vld [vmem:[#allocation6 + $0x4c] sm:$0xf]  ;;  %205 = vmatpush.bf16.msra.mxu3 %v1359_v12  ;;  %v1339_v21 = vor.u32 %v1895_v19, %v1338_v18  ;;  %v1340_v22 = vld [vmem:[#allocation6 + $0x58] sm:$0xf0]  ;;  %v1314_v23 = vld [vmem:[#allocation6 + $0x20] sm:$0xf] }
  0x14   :  { %v1890_v24 = vld [vmem:[#allocation6 + $0x2c] sm:$0xf0]  ;;  %v1343_v25 = vor.u32 %v1893_v20, %v1340_v22  ;;  %v1888_v26 = vld [vmem:[#allocation6 + $0x24] sm:$0xf]  ;;  %v1316_v27 = vld [vmem:[#allocation6 + $0x30] sm:$0xf0] }
  0x15   :  { %v1322_v28 = vld [vmem:[#allocation6 + $0x28] sm:$0xf]  ;;  %167 = vmatpush.bf16.msra.mxu0 %v1331_v16  ;;  %v1315_v29 = vor.u32 %v1890_v24, %v1314_v23  ;;  %v1891_v30 = vld [vmem:[#allocation6 + $0x34] sm:$0xf0]  ;;  %v1889_v31 = vld [vmem:[#allocation6 + $0x2c] sm:$0xf]  ;;  %v1319_v33 = vor.u32 %v1888_v26, %v1316_v27 }
  0x16   :  { %v1324_v32 = vld [vmem:[#allocation6 + $0x38] sm:$0xf0]  ;;  %180 = vmatpush.bf16.msra.mxu1 %v1335_v17  ;;  %v1323_v34 = vor.u32 %v1891_v30, %v1322_v28  ;;  %v1298_v35 = vld [vmem:[#allocation6] sm:$0xf]  ;;  %v1886_v36 = vld [vmem:[#allocation6 + $0xc] sm:$0xf0] }
  0x17   :  { %193 = vmatpush.bf16.msra.mxu2 %v1339_v21  ;;  %v1884_v37 = vld [vmem:[#allocation6 + $0x4] sm:$0xf]  ;;  %206 = vmatpush.bf16.msra.mxu3 %v1343_v25  ;;  %v1327_v38 = vor.u32 %v1889_v31, %v1324_v32  ;;  %v1300_v39 = vld [vmem:[#allocation6 + $0x10] sm:$0xf0]  ;;  %v1306_v40 = vld [vmem:[#allocation6 + $0x8] sm:$0xf]  ;;  %v1299_v44 = vor.u32 %v1886_v36, %v1298_v35 }
  0x18   :  { %v1887_v41 = vld [vmem:[#allocation6 + $0x14] sm:$0xf0]  ;;  %v1885_v42 = vld [vmem:[#allocation6 + $0xc] sm:$0xf]  ;;  %v1308_v43 = vld [vmem:[#allocation6 + $0x18] sm:$0xf0]  ;;  %v1303_v48 = vor.u32 %v1884_v37, %v1300_v39 }
  0x19   :  { %168 = vmatpush.bf16.msra.mxu0 %v1315_v29  ;;  %v1482_v45 = vld [vmem:[#allocation8 + $0xe0] sm:$0xf]  ;;  %v1930_v46 = vld [vmem:[#allocation8 + $0xec] sm:$0xf0]  ;;  %v1307_v49 = vor.u32 %v1887_v41, %v1306_v40  ;;  %vm158_vm0 = vcmask 523264   ;;  %v1311_v51 = vor.u32 %v1885_v42, %v1308_v43  ;;  %s2157_s0 = smov [#allocation9]  }
  0x1a   :  { %v1610_v47 = vld [vmem:[#allocation8 + $0x1e0] sm:$0xf]  ;;  %181 = vmatpush.bf16.msra.mxu1 %v1319_v33  ;;  %v1962_v50 = vld [vmem:[#allocation8 + $0x1ec] sm:$0xf0]  ;;  %v1483_v52 = vor.u32 %v1930_v46, %v1482_v45  ;;  %v61_v60 = vld [vmem:[#allocation3] sm:$0xf] }
  0x1b   :  { %194 = vmatpush.bf16.msra.mxu2 %v1323_v34  ;;  %207 = vmatpush.bf16.msra.mxu3 %v1327_v38  ;;  %v1466_v53 = vld [vmem:[#allocation8 + $0xc0] sm:$0xf]  ;;  %v1926_v54 = vld [vmem:[#allocation8 + $0xcc] sm:$0xf0]  ;;  %v1611_v56 = vor.u32 %v1962_v50, %v1610_v47  ;;  %s1283_s2 = sshll.u32 %s2157_s0, 4  ;;  %s1285_s30 = sshll.u32 %s2221_s3, 4  ;;  %s1284_s2 = int_to_ptr.vmem [resolvable:$true] %s1283_s2  ;;  %s1286_s30 = int_to_ptr.hbm [resolvable:$true] %s1285_s30 }
  0x1c   :  { %v1738_v55 = vld [vmem:[#allocation8 + $0x2e0] sm:$0xf]  ;;  %v1994_v57 = vld [vmem:[#allocation8 + $0x2ec] sm:$0xf0]  ;;  %v1467_v0 = vor.u32 %v1926_v54, %v1466_v53 }
  0x1d   :  { %v1866_v58 = vld [vmem:[#allocation8 + $0x3e0] sm:$0xf]  ;;  %v2026_v59 = vld [vmem:[#allocation8 + $0x3ec] sm:$0xf0]  ;;  %169 = vmatpush.bf16.msra.mxu0 %v1299_v44  ;;  %v1739_v63 = vor.u32 %v1994_v57, %v1738_v55 }
  0x1e   :  { %v1594_v61 = vld [vmem:[#allocation8 + $0x1c0] sm:$0xf]  ;;  %v1958_v62 = vld [vmem:[#allocation8 + $0x1cc] sm:$0xf0]  ;;  %182 = vmatpush.bf16.msra.mxu1 %v1303_v48  ;;  %v1867_v1 = vor.u32 %v2026_v59, %v1866_v58 }
  0x1f   :  { %195 = vmatpush.bf16.msra.mxu2 %v1307_v49  ;;  %208 = vmatpush.bf16.msra.mxu3 %v1311_v51  ;;  %v1450_v2 = vld [vmem:[#allocation8 + $0xa0] sm:$0xf]  ;;  %v1990_v4 = vld [vmem:[#allocation8 + $0x2cc] sm:$0xf0]  ;;  %v1595_v5 = vor.u32 %v1958_v62, %v1594_v61 }
  0x20   :  { %v1722_v3 = vld [vmem:[#allocation8 + $0x2c0] sm:$0xf]  ;;  %1360 = vmatmul.msk.bf16.vlgmr.msra.gmra.mxu0 %vm158_vm0, %v61_v60  ;;  %v1922_v6 = vld [vmem:[#allocation8 + $0xac] sm:$0xf0] }
  0x21   :  { %1034 = vmatpush.bf16.msrb.mxu0 %v1483_v52  ;;  %v1850_v7 = vld [vmem:[#allocation8 + $0x3c0] sm:$0xf]  ;;  %v2022_v8 = vld [vmem:[#allocation8 + $0x3cc] sm:$0xf0]  ;;  %1361 = vmatmul.msk.bf16.vlgmr.msra.gmra.mxu1 %vm158_vm0, %v61_v60  ;;  %v1723_v11 = vor.u32 %v1990_v4, %v1722_v3  ;;  %v1451_v12 = vor.u32 %v1922_v6, %v1450_v2 }
  0x22   :  { %1047 = vmatpush.bf16.msrb.mxu1 %v1611_v56  ;;  %1362 = vmatmul.msk.bf16.vlgmr.msra.gmra.mxu2 %vm158_vm0, %v61_v60  ;;  %v1578_v9 = vld [vmem:[#allocation8 + $0x1a0] sm:$0xf]  ;;  %v1954_v10 = vld [vmem:[#allocation8 + $0x1ac] sm:$0xf0]  ;;  %v1851_v13 = vor.u32 %v2022_v8, %v1850_v7  ;;  %v1928_v7 = vld [vmem:[#allocation8 + $0xe4] sm:$0xf] }
  0x23   :  { %1363 = vmatmul.msk.bf16.vlgmr.msra.gmra.mxu3 %vm158_vm0, %v61_v60  ;;  %1060 = vmatpush.bf16.msrb.mxu2 %v1739_v63  ;;  %v1434_v14 = vld [vmem:[#allocation8 + $0x80] sm:$0xf]  ;;  %v1986_v16 = vld [vmem:[#allocation8 + $0x2ac] sm:$0xf0]  ;;  %v1579_v17 = vor.u32 %v1954_v10, %v1578_v9  ;;  %v1484_v8 = vld [vmem:[#allocation8 + $0xf0] sm:$0xf0] }
  0x24   :  { %1073 = vmatpush.bf16.msrb.mxu3 %v1867_v1  ;;  %v1706_v15 = vld [vmem:[#allocation8 + $0x2a0] sm:$0xf]  ;;  %v1918_v18 = vld [vmem:[#allocation8 + $0x8c] sm:$0xf0]  ;;  %v1960_v9 = vld [vmem:[#allocation8 + $0x1e4] sm:$0xf] }
  0x25   :  { %1035 = vmatpush.bf16.msrb.mxu0 %v1467_v0  ;;  %v1834_v19 = vld [vmem:[#allocation8 + $0x3a0] sm:$0xf]  ;;  %v2018_v20 = vld [vmem:[#allocation8 + $0x3ac] sm:$0xf0]  ;;  %v1707_v23 = vor.u32 %v1986_v16, %v1706_v15  ;;  %v1435_v24 = vor.u32 %v1918_v18, %v1434_v14  ;;  %v1612_v10 = vld [vmem:[#allocation8 + $0x1f0] sm:$0xf0]  ;;  %v1487_v15 = vor.u32 %v1928_v7, %v1484_v8 }
  0x26   :  { %1048 = vmatpush.bf16.msrb.mxu1 %v1595_v5  ;;  %v1562_v21 = vld [vmem:[#allocation8 + $0x180] sm:$0xf]  ;;  %v1950_v22 = vld [vmem:[#allocation8 + $0x18c] sm:$0xf0]  ;;  %v1835_v25 = vor.u32 %v2018_v20, %v1834_v19  ;;  %v1615_v16 = vor.u32 %v1960_v9, %v1612_v10  ;;  %v1468_v18 = vld [vmem:[#allocation8 + $0xd0] sm:$0xf0] }
  0x27   :  { %1061 = vmatpush.bf16.msrb.mxu2 %v1723_v11  ;;  %v1418_v26 = vld [vmem:[#allocation8 + $0x60] sm:$0xf]  ;;  %v1982_v28 = vld [vmem:[#allocation8 + $0x28c] sm:$0xf0]  ;;  %v1563_v29 = vor.u32 %v1950_v22, %v1562_v21  ;;  %v1956_v19 = vld [vmem:[#allocation8 + $0x1c4] sm:$0xf] }
  0x28   :  { %1074 = vmatpush.bf16.msrb.mxu3 %v1851_v13  ;;  %v1690_v27 = vld [vmem:[#allocation8 + $0x280] sm:$0xf]  ;;  %v1914_v30 = vld [vmem:[#allocation8 + $0x6c] sm:$0xf0]  ;;  %v1596_v21 = vld [vmem:[#allocation8 + $0x1d0] sm:$0xf0] }
  0x29   :  { %1036 = vmatpush.bf16.msrb.mxu0 %v1451_v12  ;;  %v1818_v31 = vld [vmem:[#allocation8 + $0x380] sm:$0xf]  ;;  %v2014_v32 = vld [vmem:[#allocation8 + $0x38c] sm:$0xf0]  ;;  %v1691_v35 = vor.u32 %v1982_v28, %v1690_v27  ;;  %v1419_v36 = vor.u32 %v1914_v30, %v1418_v26  ;;  %v1992_v28 = vld [vmem:[#allocation8 + $0x2e4] sm:$0xf] }
  0x2a   :  { %1049 = vmatpush.bf16.msrb.mxu1 %v1579_v17  ;;  %v1546_v33 = vld [vmem:[#allocation8 + $0x160] sm:$0xf]  ;;  %v1946_v34 = vld [vmem:[#allocation8 + $0x16c] sm:$0xf0]  ;;  %v1819_v37 = vor.u32 %v2014_v32, %v1818_v31  ;;  %v1924_v17 = vld [vmem:[#allocation8 + $0xc4] sm:$0xf] }
  0x2b   :  { %1062 = vmatpush.bf16.msrb.mxu2 %v1707_v23  ;;  %v1402_v38 = vld [vmem:[#allocation8 + $0x40] sm:$0xf]  ;;  %v1978_v40 = vld [vmem:[#allocation8 + $0x26c] sm:$0xf0]  ;;  %v1547_v41 = vor.u32 %v1946_v34, %v1546_v33  ;;  %v1471_v20 = vor.u32 %v1924_v17, %v1468_v18  ;;  %v1740_v30 = vld [vmem:[#allocation8 + $0x2f0] sm:$0xf0] }
  0x2c   :  { %1075 = vmatpush.bf16.msrb.mxu3 %v1835_v25  ;;  %v1674_v39 = vld [vmem:[#allocation8 + $0x260] sm:$0xf]  ;;  %v1910_v42 = vld [vmem:[#allocation8 + $0x4c] sm:$0xf0]  ;;  %v2024_v31 = vld [vmem:[#allocation8 + $0x3e4] sm:$0xf]  ;;  %v1743_v33 = vor.u32 %v1992_v28, %v1740_v30 }
  0x2d   :  { %1037 = vmatpush.bf16.msrb.mxu0 %v1435_v24  ;;  %v1802_v43 = vld [vmem:[#allocation8 + $0x360] sm:$0xf]  ;;  %v2010_v44 = vld [vmem:[#allocation8 + $0x36c] sm:$0xf0]  ;;  %v1675_v47 = vor.u32 %v1978_v40, %v1674_v39  ;;  %v1403_v48 = vor.u32 %v1910_v42, %v1402_v38  ;;  %v1599_v24 = vor.u32 %v1956_v19, %v1596_v21  ;;  %v1868_v32 = vld [vmem:[#allocation8 + $0x3f0] sm:$0xf0] }
  0x2e   :  { %1050 = vmatpush.bf16.msrb.mxu1 %v1563_v29  ;;  %v1530_v45 = vld [vmem:[#allocation8 + $0x140] sm:$0xf]  ;;  %v1942_v46 = vld [vmem:[#allocation8 + $0x14c] sm:$0xf0]  ;;  %v1803_v49 = vor.u32 %v2010_v44, %v1802_v43  ;;  %v1871_v34 = vor.u32 %v2024_v31, %v1868_v32  ;;  %v1580_v39 = vld [vmem:[#allocation8 + $0x1b0] sm:$0xf0] }
  0x2f   :  { %1063 = vmatpush.bf16.msrb.mxu2 %v1691_v35  ;;  %v1386_v50 = vld [vmem:[#allocation8 + $0x20] sm:$0xf]  ;;  %v1974_v52 = vld [vmem:[#allocation8 + $0x24c] sm:$0xf0]  ;;  %v1531_v53 = vor.u32 %v1942_v46, %v1530_v45  ;;  %v1920_v35 = vld [vmem:[#allocation8 + $0xa4] sm:$0xf] }
  0x30   :  { %1076 = vmatpush.bf16.msrb.mxu3 %v1819_v37  ;;  %v1658_v51 = vld [vmem:[#allocation8 + $0x240] sm:$0xf]  ;;  %v1906_v54 = vld [vmem:[#allocation8 + $0x2c] sm:$0xf0]  ;;  %v1952_v37 = vld [vmem:[#allocation8 + $0x1a4] sm:$0xf] }
  0x31   :  { %1038 = vmatpush.bf16.msrb.mxu0 %v1419_v36  ;;  %v1786_v55 = vld [vmem:[#allocation8 + $0x340] sm:$0xf]  ;;  %v2006_v56 = vld [vmem:[#allocation8 + $0x34c] sm:$0xf0]  ;;  %v1659_v59 = vor.u32 %v1974_v52, %v1658_v51  ;;  %v1387_v61 = vor.u32 %v1906_v54, %v1386_v50  ;;  %v1452_v36 = vld [vmem:[#allocation8 + $0xb0] sm:$0xf0]  ;;  %v1583_v40 = vor.u32 %v1952_v37, %v1580_v39 }
  0x32   :  { %1051 = vmatpush.bf16.msrb.mxu1 %v1547_v41  ;;  %v1514_v57 = vld [vmem:[#allocation8 + $0x120] sm:$0xf]  ;;  %v1938_v58 = vld [vmem:[#allocation8 + $0x12c] sm:$0xf0]  ;;  %v1787_v62 = vor.u32 %v2006_v56, %v1786_v55  ;;  %v1455_v38 = vor.u32 %v1920_v35, %v1452_v36  ;;  %v1988_v41 = vld [vmem:[#allocation8 + $0x2c4] sm:$0xf] }
  0x33   :  { %1064 = vmatpush.bf16.msrb.mxu2 %v1675_v47  ;;  %v1370_v60 = vld [vmem:[#allocation8] sm:$0xf]  ;;  %v1902_v63 = vld [vmem:[#allocation8 + $0xc] sm:$0xf0]  ;;  %v1515_v2 = vor.u32 %v1938_v58, %v1514_v57  ;;  %v1724_v42 = vld [vmem:[#allocation8 + $0x2d0] sm:$0xf0] }
  0x34   :  { %1077 = vmatpush.bf16.msrb.mxu3 %v1803_v49  ;;  %v1642_v0 = vld [vmem:[#allocation8 + $0x220] sm:$0xf]  ;;  %v1970_v1 = vld [vmem:[#allocation8 + $0x22c] sm:$0xf0]  ;;  %v1371_v12 = vor.u32 %v1902_v63, %v1370_v60  ;;  %v2020_v43 = vld [vmem:[#allocation8 + $0x3c4] sm:$0xf]  ;;  %v1727_v44 = vor.u32 %v1988_v41, %v1724_v42 }
  0x35   :  { %1039 = vmatpush.bf16.msrb.mxu0 %v1403_v48  ;;  %v1498_v3 = vld [vmem:[#allocation8 + $0x100] sm:$0xf]  ;;  %v2002_v5 = vld [vmem:[#allocation8 + $0x32c] sm:$0xf0]  ;;  %v1643_v11 = vor.u32 %v1970_v1, %v1642_v0  ;;  %v1852_v45 = vld [vmem:[#allocation8 + $0x3d0] sm:$0xf0] }
  0x36   :  { %1052 = vmatpush.bf16.msrb.mxu1 %v1531_v53  ;;  %v1770_v4 = vld [vmem:[#allocation8 + $0x320] sm:$0xf]  ;;  %v1934_v6 = vld [vmem:[#allocation8 + $0x10c] sm:$0xf0]  ;;  %v1855_v46 = vor.u32 %v2020_v43, %v1852_v45  ;;  %v1916_v47 = vld [vmem:[#allocation8 + $0x84] sm:$0xf] }
  0x37   :  { %1065 = vmatpush.bf16.msrb.mxu2 %v1659_v59  ;;  %v1771_v13 = vor.u32 %v2002_v5, %v1770_v4  ;;  %v1499_v14 = vor.u32 %v1934_v6, %v1498_v3  ;;  %v1626_v22 = vld [vmem:[#allocation8 + $0x200] sm:$0xf]  ;;  %v1966_v23 = vld [vmem:[#allocation8 + $0x20c] sm:$0xf0]  ;;  %v1436_v48 = vld [vmem:[#allocation8 + $0x90] sm:$0xf0] }
  0x38   :  { %1078 = vmatpush.bf16.msrb.mxu3 %v1787_v62  ;;  %v1627_v25 = vor.u32 %v1966_v23, %v1626_v22  ;;  %v1754_v26 = vld [vmem:[#allocation8 + $0x300] sm:$0xf]  ;;  %v1998_v27 = vld [vmem:[#allocation8 + $0x30c] sm:$0xf0]  ;;  %v1948_v49 = vld [vmem:[#allocation8 + $0x184] sm:$0xf]  ;;  %v1439_v50 = vor.u32 %v1916_v47, %v1436_v48 }
  0x39   :  { %1040 = vmatpush.bf16.msrb.mxu0 %v1387_v61  ;;  %v1755_v29 = vor.u32 %v1998_v27, %v1754_v26  ;;  %v1564_v51 = vld [vmem:[#allocation8 + $0x190] sm:$0xf0]  ;;  %v1984_v53 = vld [vmem:[#allocation8 + $0x2a4] sm:$0xf] }
  0x3a   :  { %1053 = vmatpush.bf16.msrb.mxu1 %v1515_v2  ;;  %v1567_v52 = vor.u32 %v1948_v49, %v1564_v51  ;;  %v1708_v54 = vld [vmem:[#allocation8 + $0x2b0] sm:$0xf0]  ;;  %v2016_v55 = vld [vmem:[#allocation8 + $0x3a4] sm:$0xf] }
  0x3b   :  { %1066 = vmatpush.bf16.msrb.mxu2 %v1643_v11  ;;  %v1711_v56 = vor.u32 %v1984_v53, %v1708_v54  ;;  %v1836_v57 = vld [vmem:[#allocation8 + $0x3b0] sm:$0xf0]  ;;  %v1912_v59 = vld [vmem:[#allocation8 + $0x64] sm:$0xf] }
  0x3c   :  { %1079 = vmatpush.bf16.msrb.mxu3 %v1771_v13  ;;  %v1839_v58 = vor.u32 %v2016_v55, %v1836_v57  ;;  %v1420_v60 = vld [vmem:[#allocation8 + $0x70] sm:$0xf0]  ;;  %v1944_v61 = vld [vmem:[#allocation8 + $0x164] sm:$0xf] }
  0x3d   :  { %1041 = vmatpush.bf16.msrb.mxu0 %v1371_v12  ;;  %v1423_v62 = vor.u32 %v1912_v59, %v1420_v60  ;;  %v1548_v63 = vld [vmem:[#allocation8 + $0x170] sm:$0xf0]  ;;  %v1980_v1 = vld [vmem:[#allocation8 + $0x284] sm:$0xf] }
  0x3e   :  { %1054 = vmatpush.bf16.msrb.mxu1 %v1499_v14  ;;  %v1551_v0 = vor.u32 %v1944_v61, %v1548_v63  ;;  %v1692_v2 = vld [vmem:[#allocation8 + $0x290] sm:$0xf0]  ;;  %v2012_v3 = vld [vmem:[#allocation8 + $0x384] sm:$0xf] }
  0x3f   :  { %1067 = vmatpush.bf16.msrb.mxu2 %v1627_v25  ;;  %v1695_v4 = vor.u32 %v1980_v1, %v1692_v2  ;;  %v1820_v5 = vld [vmem:[#allocation8 + $0x390] sm:$0xf0]  ;;  %v1908_v7 = vld [vmem:[#allocation8 + $0x44] sm:$0xf] }
  0x40   :  { %1080 = vmatpush.bf16.msrb.mxu3 %v1755_v29  ;;  %v1823_v6 = vor.u32 %v2012_v3, %v1820_v5  ;;  %v1404_v8 = vld [vmem:[#allocation8 + $0x50] sm:$0xf0]  ;;  %v1940_v9 = vld [vmem:[#allocation8 + $0x144] sm:$0xf] }
  0x41   :  { %1086 = vmatpush.bf16.msra.mxu0 %v1487_v15  ;;  %v1407_v10 = vor.u32 %v1908_v7, %v1404_v8  ;;  %v1532_v11 = vld [vmem:[#allocation8 + $0x150] sm:$0xf0]  ;;  %v1976_v13 = vld [vmem:[#allocation8 + $0x264] sm:$0xf] }
  0x42   :  { %1099 = vmatpush.bf16.msra.mxu1 %v1615_v16  ;;  %v1535_v12 = vor.u32 %v1940_v9, %v1532_v11  ;;  %v1676_v14 = vld [vmem:[#allocation8 + $0x270] sm:$0xf0]  ;;  %v2008_v15 = vld [vmem:[#allocation8 + $0x364] sm:$0xf] }
  0x43   :  { %1112 = vmatpush.bf16.msra.mxu2 %v1743_v33  ;;  %v1679_v16 = vor.u32 %v1976_v13, %v1676_v14  ;;  %v1804_v17 = vld [vmem:[#allocation8 + $0x370] sm:$0xf0]  ;;  %v1904_v19 = vld [vmem:[#allocation8 + $0x24] sm:$0xf]  ;;  %v1490_v14 = vld [vmem:[#allocation8 + $0xe8] sm:$0xf] }
  0x44   :  { %1125 = vmatpush.bf16.msra.mxu3 %v1871_v34  ;;  %v1807_v18 = vor.u32 %v2008_v15, %v1804_v17  ;;  %v1936_v21 = vld [vmem:[#allocation8 + $0x124] sm:$0xf]  ;;  %v1516_v23 = vld [vmem:[#allocation8 + $0x130] sm:$0xf0]  ;;  %v1931_v15 = vld [vmem:[#allocation8 + $0xf4] sm:$0xf0] }
  0x45   :  { %1087 = vmatpush.bf16.msra.mxu0 %v1471_v20  ;;  %v1388_v20 = vld [vmem:[#allocation8 + $0x30] sm:$0xf0]  ;;  %v1972_v25 = vld [vmem:[#allocation8 + $0x244] sm:$0xf] }
  0x46   :  { %1100 = vmatpush.bf16.msra.mxu1 %v1599_v24  ;;  %v1391_v22 = vor.u32 %v1904_v19, %v1388_v20  ;;  %v1519_v24 = vor.u32 %v1936_v21, %v1516_v23  ;;  %v1660_v26 = vld [vmem:[#allocation8 + $0x250] sm:$0xf0]  ;;  %v2004_v27 = vld [vmem:[#allocation8 + $0x344] sm:$0xf]  ;;  %v1963_v19 = vld [vmem:[#allocation8 + $0x1f4] sm:$0xf0] }
  0x47   :  { %1113 = vmatpush.bf16.msra.mxu2 %v1727_v44  ;;  %v1663_v28 = vor.u32 %v1972_v25, %v1660_v26  ;;  %v1788_v29 = vld [vmem:[#allocation8 + $0x350] sm:$0xf0]  ;;  %v1900_v31 = vld [vmem:[#allocation8 + $0x4] sm:$0xf]  ;;  %v1491_v25 = vor.u32 %v1931_v15, %v1490_v14  ;;  %v1983_v14 = vld [vmem:[#allocation8 + $0x294] sm:$0xf0] }
  0x48   :  { %1126 = vmatpush.bf16.msra.mxu3 %v1855_v46  ;;  %v1791_v30 = vor.u32 %v2004_v27, %v1788_v29  ;;  %v1372_v32 = vld [vmem:[#allocation8 + $0x10] sm:$0xf0]  ;;  %v1932_v33 = vld [vmem:[#allocation8 + $0x104] sm:$0xf]  ;;  %v1474_v27 = vld [vmem:[#allocation8 + $0xc8] sm:$0xf] }
  0x49   :  { %1088 = vmatpush.bf16.msra.mxu0 %v1455_v38  ;;  %v1375_v34 = vor.u32 %v1900_v31, %v1372_v32  ;;  %v1500_v35 = vld [vmem:[#allocation8 + $0x110] sm:$0xf0]  ;;  %v1968_v37 = vld [vmem:[#allocation8 + $0x224] sm:$0xf]  ;;  %v1826_v15 = vld [vmem:[#allocation8 + $0x388] sm:$0xf] }
  0x4a   :  { %1101 = vmatpush.bf16.msra.mxu1 %v1583_v40  ;;  %v1503_v36 = vor.u32 %v1932_v33, %v1500_v35  ;;  %v1644_v38 = vld [vmem:[#allocation8 + $0x230] sm:$0xf0]  ;;  %v2000_v39 = vld [vmem:[#allocation8 + $0x324] sm:$0xf]  ;;  %v1602_v33 = vld [vmem:[#allocation8 + $0x1c8] sm:$0xf] }
  0x4b   :  { %1114 = vmatpush.bf16.msra.mxu2 %v1711_v56  ;;  %v1772_v40 = vld [vmem:[#allocation8 + $0x330] sm:$0xf0]  ;;  %v1647_v41 = vor.u32 %v1968_v37, %v1644_v38  ;;  %v1964_v43 = vld [vmem:[#allocation8 + $0x204] sm:$0xf]  ;;  %v1995_v37 = vld [vmem:[#allocation8 + $0x2f4] sm:$0xf0] }
  0x4c   :  { %1127 = vmatpush.bf16.msra.mxu3 %v1839_v58  ;;  %v1775_v42 = vor.u32 %v2000_v39, %v1772_v40  ;;  %v1628_v44 = vld [vmem:[#allocation8 + $0x210] sm:$0xf0]  ;;  %v1996_v46 = vld [vmem:[#allocation8 + $0x304] sm:$0xf]  ;;  %v1874_v38 = vld [vmem:[#allocation8 + $0x3e8] sm:$0xf] }
  0x4d   :  { %1089 = vmatpush.bf16.msra.mxu0 %v1439_v50  ;;  %v1631_v45 = vor.u32 %v1964_v43, %v1628_v44  ;;  %v1756_v47 = vld [vmem:[#allocation8 + $0x310] sm:$0xf0]  ;;  %v1458_v43 = vld [vmem:[#allocation8 + $0xa8] sm:$0xf]  ;;  %v1923_v44 = vld [vmem:[#allocation8 + $0xb4] sm:$0xf0] }
  0x4e   :  { %1102 = vmatpush.bf16.msra.mxu1 %v1567_v52  ;;  %v1759_v48 = vor.u32 %v1996_v46, %v1756_v47  ;;  %v1955_v46 = vld [vmem:[#allocation8 + $0x1b4] sm:$0xf0] }
  0x4f   :  { %1115 = vmatpush.bf16.msra.mxu2 %v1695_v4 }
  0x50   :  { %1128 = vmatpush.bf16.msra.mxu3 %v1823_v6 }
  0x51   :  { %1090 = vmatpush.bf16.msra.mxu0 %v1423_v62 }
  0x52   :  { %1103 = vmatpush.bf16.msra.mxu1 %v1551_v0 }
  0x53   :  { %1116 = vmatpush.bf16.msra.mxu2 %v1679_v16 }
  0x54   :  { %1129 = vmatpush.bf16.msra.mxu3 %v1807_v18  ;;  %v1618_v18 = vld [vmem:[#allocation8 + $0x1e8] sm:$0xf] }
  0x55   :  { %1091 = vmatpush.bf16.msra.mxu0 %v1407_v10  ;;  %v1619_v26 = vor.u32 %v1963_v19, %v1618_v18  ;;  %v1410_v19 = vld [vmem:[#allocation8 + $0x48] sm:$0xf] }
  0x56   :  { %1104 = vmatpush.bf16.msra.mxu1 %v1535_v12 }
  0x57   :  { %1117 = vmatpush.bf16.msra.mxu2 %v1663_v28  ;;  %v1927_v28 = vld [vmem:[#allocation8 + $0xd4] sm:$0xf0] }
  0x58   :  { %1130 = vmatpush.bf16.msra.mxu3 %v1791_v30  ;;  %v1475_v40 = vor.u32 %v1927_v28, %v1474_v27  ;;  %v1810_v27 = vld [vmem:[#allocation8 + $0x368] sm:$0xf]  ;;  %v2011_v28 = vld [vmem:[#allocation8 + $0x374] sm:$0xf0] }
  0x59   :  { %1092 = vmatpush.bf16.msra.mxu0 %v1391_v22 }
  0x5a   :  { %1105 = vmatpush.bf16.msra.mxu1 %v1519_v24 }
  0x5b   :  { %1118 = vmatpush.bf16.msra.mxu2 %v1647_v41 }
  0x5c   :  { %1131 = vmatpush.bf16.msra.mxu3 %v1775_v42  ;;  %v2027_v42 = vld [vmem:[#allocation8 + $0x3f4] sm:$0xf0] }
  0x5d   :  { %1093 = vmatpush.bf16.msra.mxu0 %v1375_v34  ;;  %v1959_v34 = vld [vmem:[#allocation8 + $0x1d4] sm:$0xf0] }
  0x5e   :  { %1106 = vmatpush.bf16.msra.mxu1 %v1503_v36  ;;  %v1746_v36 = vld [vmem:[#allocation8 + $0x2e8] sm:$0xf]  ;;  %v1603_v41 = vor.u32 %v1959_v34, %v1602_v33  ;;  %v1907_v34 = vld [vmem:[#allocation8 + $0x34] sm:$0xf0] }
  0x5f   :  { %1119 = vmatpush.bf16.msra.mxu2 %v1631_v45  ;;  %v1586_v45 = vld [vmem:[#allocation8 + $0x1a8] sm:$0xf] }
  0x60   :  { %1132 = vmatpush.bf16.msra.mxu3 %v1759_v48  ;;  %v1394_v33 = vld [vmem:[#allocation8 + $0x28] sm:$0xf] }
  0x9d   :  { %v171_v49 = vpop.f32.mrf.mxu0 }
  0x9e   :  { %v214_v50 = vmin.f32 %v171_v49, 0.0  ;;  %v184_v51 = vpop.f32.mrf.mxu1  ;;  %vm234_vm1 = vcmp.gt.f32.partialorder %v171_v49, 0.0 }
  0x9f   :  { %v215_v52 = vmin.f32 %v184_v51, 0.0  ;;  %vm235_vm2 = vcmp.gt.f32.partialorder %v184_v51, 0.0 }
  0xa0   :  { %v218_v53 = vmul.f32 1.442695, %v214_v50  ;;  %v1875_v50 = vor.u32 %v2027_v42, %v1874_v38  ;;  %v1811_v38 = vor.u32 %v2011_v28, %v1810_v27  ;;  %v2007_v42 = vld [vmem:[#allocation8 + $0x354] sm:$0xf0]  ;;  %v2021_v27 = vld [vmem:[#allocation8 + $0x3cc] sm:$0xf] }
  0xa1   :  { %v220_v54 = vmul.f32 1.442695, %v215_v52  ;;  %v1730_v52 = vld [vmem:[#allocation8 + $0x2c8] sm:$0xf]  ;;  %v1860_v28 = vld [vmem:[#allocation8 + $0x3d8] sm:$0xf0] }
  0xa2   :  { %2034 = vpow2.f32 %v218_v53  ;;  %v1991_v53 = vld [vmem:[#allocation8 + $0x2d4] sm:$0xf0] }
  0xa3   :  { %2036 = vpow2.f32 %v220_v54 }
  0xa5   :  { %v197_v55 = vpop.f32.mrf.mxu2  ;;  %v173_v58 = vpop.f32.mrf.mxu0 }
  0xa6   :  { %v216_v56 = vmin.f32 %v197_v55, 0.0  ;;  %v210_v57 = vpop.f32.mrf.mxu3  ;;  %v186_v60 = vpop.f32.mrf.mxu1  ;;  %vm236_vm3 = vcmp.gt.f32.partialorder %v197_v55, 0.0  ;;  %v2023_v58 = vld [vmem:[#allocation8 + $0x3d4] sm:$0xf0] }
  0xa7   :  { %v217_v59 = vmin.f32 %v210_v57, 0.0  ;;  %vm237_vm4 = vcmp.gt.f32.partialorder %v210_v57, 0.0  ;;  %v1919_v60 = vld [vmem:[#allocation8 + $0x94] sm:$0xf0] }
  0xa8   :  { %v222_v61 = vmul.f32 1.442695, %v216_v56  ;;  %v2035_v62 = vpop.eup %2034  ;;  %v1587_v56 = vor.u32 %v1955_v46, %v1586_v45  ;;  %v1378_v45 = vld [vmem:[#allocation8 + $0x8] sm:$0xf]  ;;  %v1903_v46 = vld [vmem:[#allocation8 + $0x14] sm:$0xf0] }
  0xa9   :  { %v224_v63 = vmul.f32 1.442695, %v217_v59  ;;  %v2037_v0 = vpop.eup %2036  ;;  %v1364_v1 = vadd.f32 -1.0, %v2035_v62  ;;  %v1442_v59 = vld [vmem:[#allocation8 + $0x88] sm:$0xf] }
  0xaa   :  { %2038 = vpow2.f32 %v222_v61  ;;  %v1365_v2 = vadd.f32 -1.0, %v2037_v0  ;;  %v1570_v61 = vld [vmem:[#allocation8 + $0x188] sm:$0xf]  ;;  %v1951_v62 = vld [vmem:[#allocation8 + $0x194] sm:$0xf0] }
  0xab   :  { %2040 = vpow2.f32 %v224_v63  ;;  %v230_v3 = vmul.f32 1.6732632, %v1364_v1  ;;  %v1731_v63 = vor.u32 %v1991_v53, %v1730_v52  ;;  %v1714_v1 = vld [vmem:[#allocation8 + $0x2a8] sm:$0xf]  ;;  %v1961_v53 = vld [vmem:[#allocation8 + $0x1ec] sm:$0xf] }
  0xac   :  { %v231_v4 = vmul.f32 1.6732632, %v1365_v2  ;;  %v1443_v2 = vor.u32 %v1919_v60, %v1442_v59  ;;  %v1778_v59 = vld [vmem:[#allocation8 + $0x328] sm:$0xf]  ;;  %v2003_v60 = vld [vmem:[#allocation8 + $0x334] sm:$0xf0] }
  0xad   :  { %v199_v5 = vpop.f32.mrf.mxu2  ;;  %v238_v6 = vsel %vm234_vm1, %v171_v49, %v230_v3  ;;  %v1747_v49 = vor.u32 %v1995_v37, %v1746_v36  ;;  %v1571_v3 = vor.u32 %v1951_v62, %v1570_v61  ;;  %v1939_v36 = vld [vmem:[#allocation8 + $0x134] sm:$0xf0]  ;;  %v1379_v61 = vor.u32 %v1903_v46, %v1378_v45  ;;  %v1913_v45 = vld [vmem:[#allocation8 + $0x6c] sm:$0xf]  ;;  %v1428_v46 = vld [vmem:[#allocation8 + $0x78] sm:$0xf0] }
  0xae   :  { %v212_v7 = vpop.f32.mrf.mxu3  ;;  %v242_v8 = vmul.f32 1.050701, %v238_v6  ;;  %v239_v9 = vsel %vm235_vm2, %v184_v51, %v231_v4  ;;  %v1459_v51 = vor.u32 %v1923_v44, %v1458_v43  ;;  %v1987_v4 = vld [vmem:[#allocation8 + $0x2b4] sm:$0xf0]  ;;  %v1842_v5 = vld [vmem:[#allocation8 + $0x3a8] sm:$0xf]  ;;  %v1395_v43 = vor.u32 %v1907_v34, %v1394_v33 }
  0xaf   :  { %v243_v11 = vmul.f32 1.050701, %v239_v9  ;;  %v2019_v6 = vld [vmem:[#allocation8 + $0x3b4] sm:$0xf0]  ;;  %v1426_v7 = vld [vmem:[#allocation8 + $0x68] sm:$0xf] }
  0xb0   :  { %v2039_v10 = vpop.eup %2038  ;;  %v1554_v9 = vld [vmem:[#allocation8 + $0x168] sm:$0xf]  ;;  %v1917_v33 = vld [vmem:[#allocation8 + $0x8c] sm:$0xf]  ;;  %v1444_v34 = vld [vmem:[#allocation8 + $0x98] sm:$0xf0] }
  0xb1   :  { %v2041_v12 = vpop.eup %2040  ;;  %v1366_v13 = vadd.f32 -1.0, %v2039_v10  ;;  %v246_v16 = vpack.c.bf16 %v243_v11, %v242_v8  ;;  %v1915_v8 = vld [vmem:[#allocation8 + $0x74] sm:$0xf0]  ;;  %v1715_v11 = vor.u32 %v1987_v4, %v1714_v1  ;;  %v1925_v1 = vld [vmem:[#allocation8 + $0xcc] sm:$0xf] }
  0xb2   :  { %v1367_v17 = vadd.f32 -1.0, %v2041_v12  ;;  %v1947_v10 = vld [vmem:[#allocation8 + $0x174] sm:$0xf0]  ;;  %v1843_v12 = vor.u32 %v2019_v6, %v1842_v5  ;;  %v1779_v5 = vor.u32 %v2003_v60, %v1778_v59  ;;  %v1604_v6 = vld [vmem:[#allocation8 + $0x1d8] sm:$0xf0] }
  0xb3   :  { %v232_v20 = vmul.f32 1.6732632, %v1366_v13  ;;  %v382_v21 = vunpack.c.l.b16 %v246_v16  ;;  %v383_v22 = vunpack.c.h.b16 %v246_v16  ;;  %v1698_v13 = vld [vmem:[#allocation8 + $0x288] sm:$0xf]  ;;  %v2015_v16 = vld [vmem:[#allocation8 + $0x394] sm:$0xf0]  ;;  %v1555_v18 = vor.u32 %v1947_v10, %v1554_v9 }
  0xb4   :  { %v233_v23 = vmul.f32 1.6732632, %v1367_v17  ;;  %v1427_v17 = vor.u32 %v1915_v8, %v1426_v7  ;;  %v1634_v7 = vld [vmem:[#allocation8 + $0x208] sm:$0xf]  ;;  %v1967_v8 = vld [vmem:[#allocation8 + $0x214] sm:$0xf0] }
  0xb5   :  { %v240_v24 = vsel %vm236_vm3, %v197_v55, %v232_v20  ;;  %v2191_v31 = vpack.c.b16 %v382_v21, %v382_v21  ;;  %v2193_v32 = vpack.c.b16 %v383_v22, %v383_v22  ;;  %v1911_v20 = vld [vmem:[#allocation8 + $0x54] sm:$0xf0]  ;;  %v1538_v21 = vld [vmem:[#allocation8 + $0x148] sm:$0xf]  ;;  %v1909_v59 = vld [vmem:[#allocation8 + $0x4c] sm:$0xf] }
  0xb6   :  { %v244_v29 = vmul.f32 1.050701, %v240_v24  ;;  %v241_v30 = vsel %vm237_vm4, %v210_v57, %v233_v23  ;;  %v1858_v57 = vld [vmem:[#allocation8 + $0x3c8] sm:$0xf]  ;;  %v1943_v22 = vld [vmem:[#allocation8 + $0x154] sm:$0xf0]  ;;  %v1699_v23 = vor.u32 %v1983_v14, %v1698_v13  ;;  %v1827_v24 = vor.u32 %v2015_v16, %v1826_v15 }
  0xb7   :  { %v245_v35 = vmul.f32 1.050701, %v241_v30  ;;  %1042 = vmatmul.bf16.vlgmr.msrb.gmra.mxu0 %v2191_v31  ;;  %1055 = vmatmul.bf16.vlgmr.msrb.gmra.mxu1 %v2193_v32  ;;  %v1859_v0 = vor.u32 %v2023_v58, %v1858_v57  ;;  %v1539_v30 = vor.u32 %v1943_v22, %v1538_v21  ;;  %v1650_v57 = vld [vmem:[#allocation8 + $0x228] sm:$0xf]  ;;  %v1971_v58 = vld [vmem:[#allocation8 + $0x234] sm:$0xf0] }
  0xb8   :  { %1138 = vmatpush.bf16.msrb.mxu0 %v1491_v25  ;;  %1151 = vmatpush.bf16.msrb.mxu1 %v1619_v26  ;;  %v1682_v25 = vld [vmem:[#allocation8 + $0x268] sm:$0xf]  ;;  %v1979_v26 = vld [vmem:[#allocation8 + $0x274] sm:$0xf0]  ;;  %v1651_v4 = vor.u32 %v1971_v58, %v1650_v57  ;;  %v2025_v13 = vld [vmem:[#allocation8 + $0x3ec] sm:$0xf]  ;;  %v1431_v57 = vor.u32 %v1913_v45, %v1428_v46 }
  0xb9   :  { %v247_v39 = vpack.c.bf16 %v245_v35, %v244_v29  ;;  %v1411_v29 = vor.u32 %v1911_v20, %v1410_v19  ;;  %v1522_v35 = vld [vmem:[#allocation8 + $0x128] sm:$0xf]  ;;  %v1683_v37 = vor.u32 %v1979_v26, %v1682_v25  ;;  %v1999_v10 = vld [vmem:[#allocation8 + $0x314] sm:$0xf0]  ;;  %v1876_v14 = vld [vmem:[#allocation8 + $0x3f8] sm:$0xf0] }
  0xba   :  { %v1523_v44 = vor.u32 %v1939_v36, %v1522_v35  ;;  %v1762_v9 = vld [vmem:[#allocation8 + $0x308] sm:$0xf]  ;;  %v1460_v20 = vld [vmem:[#allocation8 + $0xb8] sm:$0xf0]  ;;  %v1953_v21 = vld [vmem:[#allocation8 + $0x1ac] sm:$0xf] }
  0xbb   :  { %v384_v47 = vunpack.c.l.b16 %v247_v39  ;;  %v385_v48 = vunpack.c.h.b16 %v247_v39  ;;  %v1666_v39 = vld [vmem:[#allocation8 + $0x248] sm:$0xf]  ;;  %v1763_v19 = vor.u32 %v1999_v10, %v1762_v9  ;;  %v1588_v22 = vld [vmem:[#allocation8 + $0x1b8] sm:$0xf0]  ;;  %v1989_v25 = vld [vmem:[#allocation8 + $0x2cc] sm:$0xf] }
  0xbc   :  { %1139 = vmatpush.bf16.msrb.mxu0 %v1475_v40  ;;  %1152 = vmatpush.bf16.msrb.mxu1 %v1603_v41  ;;  %v1975_v40 = vld [vmem:[#allocation8 + $0x254] sm:$0xf0]  ;;  %v1794_v41 = vld [vmem:[#allocation8 + $0x348] sm:$0xf]  ;;  %v1732_v26 = vld [vmem:[#allocation8 + $0x2d8] sm:$0xf0] }
  0xbd   :  { %v2197_v54 = vpack.c.b16 %v384_v47, %v384_v47  ;;  %v2199_v55 = vpack.c.b16 %v385_v48, %v385_v48  ;;  %v1506_v47 = vld [vmem:[#allocation8 + $0x108] sm:$0xf]  ;;  %v1935_v48 = vld [vmem:[#allocation8 + $0x114] sm:$0xf0]  ;;  %v1795_v52 = vor.u32 %v2007_v42, %v1794_v41  ;;  %v1949_v35 = vld [vmem:[#allocation8 + $0x18c] sm:$0xf] }
  0xbe   :  { %v1507_v62 = vor.u32 %v1935_v48, %v1506_v47  ;;  %v1572_v36 = vld [vmem:[#allocation8 + $0x198] sm:$0xf0]  ;;  %v2017_v41 = vld [vmem:[#allocation8 + $0x3ac] sm:$0xf] }
  0xbf   :  { %1068 = vmatmul.bf16.vlgmr.msrb.gmra.mxu2 %v2197_v54  ;;  %1081 = vmatmul.bf16.vlgmr.msrb.gmra.mxu3 %v2199_v55  ;;  %v1844_v42 = vld [vmem:[#allocation8 + $0x3b8] sm:$0xf0]  ;;  %v1945_v47 = vld [vmem:[#allocation8 + $0x16c] sm:$0xf] }
  0xc0   :  { %1164 = vmatpush.bf16.msrb.mxu2 %v1747_v49  ;;  %1177 = vmatpush.bf16.msrb.mxu3 %v1875_v50  ;;  %v1929_v49 = vld [vmem:[#allocation8 + $0xec] sm:$0xf]  ;;  %v1492_v50 = vld [vmem:[#allocation8 + $0xf8] sm:$0xf0] }
  0xc1   :  { %1140 = vmatpush.bf16.msrb.mxu0 %v1459_v51  ;;  %1153 = vmatpush.bf16.msrb.mxu1 %v1587_v56  ;;  %v1667_v51 = vor.u32 %v1975_v40, %v1666_v39  ;;  %v1620_v56 = vld [vmem:[#allocation8 + $0x1f8] sm:$0xf0]  ;;  %v1985_v39 = vld [vmem:[#allocation8 + $0x2ac] sm:$0xf] }
  0xc2   :  { %v1716_v40 = vld [vmem:[#allocation8 + $0x2b8] sm:$0xf0]  ;;  %v1937_v9 = vld [vmem:[#allocation8 + $0x12c] sm:$0xf] }
  0xc3   :  { %v1556_v48 = vld [vmem:[#allocation8 + $0x178] sm:$0xf0] }
  0xc4   :  { %1165 = vmatpush.bf16.msrb.mxu2 %v1731_v63  ;;  %1178 = vmatpush.bf16.msrb.mxu3 %v1859_v0  ;;  %v1495_v63 = vor.u32 %v1929_v49, %v1492_v50  ;;  %v1623_v0 = vor.u32 %v1961_v53, %v1620_v56  ;;  %v1719_v49 = vor.u32 %v1985_v39, %v1716_v40  ;;  %v2013_v53 = vld [vmem:[#allocation8 + $0x38c] sm:$0xf]  ;;  %v1828_v56 = vld [vmem:[#allocation8 + $0x398] sm:$0xf0] }
  0xc5   :  { %1141 = vmatpush.bf16.msrb.mxu0 %v1443_v2  ;;  %1154 = vmatpush.bf16.msrb.mxu1 %v1571_v3  ;;  %v1476_v2 = vld [vmem:[#allocation8 + $0xd8] sm:$0xf0]  ;;  %v1957_v3 = vld [vmem:[#allocation8 + $0x1cc] sm:$0xf]  ;;  %v1847_v50 = vor.u32 %v2017_v41, %v1844_v42  ;;  %v1559_v58 = vor.u32 %v1945_v47, %v1556_v48 }
  0xc6   :  { %v1479_v15 = vor.u32 %v1925_v1, %v1476_v2  ;;  %v1607_v16 = vor.u32 %v1957_v3, %v1604_v6  ;;  %v1412_v60 = vld [vmem:[#allocation8 + $0x58] sm:$0xf0]  ;;  %v1977_v1 = vld [vmem:[#allocation8 + $0x26c] sm:$0xf] }
  0xc7   :  { %1094 = vmatmul.bf16.vlgmr.msra.gmra.mxu0 %v2191_v31  ;;  %1107 = vmatmul.bf16.vlgmr.msra.gmra.mxu1 %v2193_v32  ;;  %v1684_v2 = vld [vmem:[#allocation8 + $0x278] sm:$0xf0]  ;;  %v2009_v3 = vld [vmem:[#allocation8 + $0x36c] sm:$0xf] }
  0xc8   :  { %1166 = vmatpush.bf16.msrb.mxu2 %v1715_v11  ;;  %1179 = vmatpush.bf16.msrb.mxu3 %v1843_v12  ;;  %v1993_v11 = vld [vmem:[#allocation8 + $0x2ec] sm:$0xf]  ;;  %v1748_v12 = vld [vmem:[#allocation8 + $0x2f8] sm:$0xf0] }
  0xc9   :  { %1142 = vmatpush.bf16.msrb.mxu0 %v1427_v17  ;;  %1155 = vmatpush.bf16.msrb.mxu1 %v1555_v18  ;;  %v1921_v17 = vld [vmem:[#allocation8 + $0xac] sm:$0xf]  ;;  %v1635_v18 = vor.u32 %v1967_v8, %v1634_v7  ;;  %v1396_v8 = vld [vmem:[#allocation8 + $0x38] sm:$0xf0] }
  0xca   :  { %v1905_v7 = vld [vmem:[#allocation8 + $0x2c] sm:$0xf]  ;;  %v1524_v10 = vld [vmem:[#allocation8 + $0x138] sm:$0xf0] }
  0xcc   :  { %1167 = vmatpush.bf16.msrb.mxu2 %v1699_v23  ;;  %1180 = vmatpush.bf16.msrb.mxu3 %v1827_v24  ;;  %v1751_v23 = vor.u32 %v1993_v11, %v1748_v12  ;;  %v1879_v24 = vor.u32 %v2025_v13, %v1876_v14  ;;  %v1687_v11 = vor.u32 %v1977_v1, %v1684_v2  ;;  %v1973_v13 = vld [vmem:[#allocation8 + $0x24c] sm:$0xf]  ;;  %v1668_v14 = vld [vmem:[#allocation8 + $0x258] sm:$0xf0] }
  0xcd   :  { %1143 = vmatpush.bf16.msrb.mxu0 %v1411_v29  ;;  %1156 = vmatpush.bf16.msrb.mxu1 %v1539_v30  ;;  %v1463_v29 = vor.u32 %v1921_v17, %v1460_v20  ;;  %v1591_v30 = vor.u32 %v1953_v21, %v1588_v22  ;;  %v1399_v17 = vor.u32 %v1905_v7, %v1396_v8  ;;  %v1380_v20 = vld [vmem:[#allocation8 + $0x18] sm:$0xf0]  ;;  %v1933_v21 = vld [vmem:[#allocation8 + $0x10c] sm:$0xf] }
  0xce   :  { %v1508_v22 = vld [vmem:[#allocation8 + $0x118] sm:$0xf0] }
  0xcf   :  { %1120 = vmatmul.bf16.vlgmr.msra.gmra.mxu2 %v2197_v54  ;;  %1133 = vmatmul.bf16.vlgmr.msra.gmra.mxu3 %v2199_v55 }
  0xd0   :  { %1168 = vmatpush.bf16.msrb.mxu2 %v1683_v37  ;;  %1181 = vmatpush.bf16.msrb.mxu3 %v1811_v38  ;;  %v1735_v37 = vor.u32 %v1989_v25, %v1732_v26  ;;  %v1863_v38 = vor.u32 %v2021_v27, %v1860_v28  ;;  %v1969_v25 = vld [vmem:[#allocation8 + $0x22c] sm:$0xf]  ;;  %v1652_v26 = vld [vmem:[#allocation8 + $0x238] sm:$0xf0] }
  0xd1   :  { %1144 = vmatpush.bf16.msrb.mxu0 %v1395_v43  ;;  %1157 = vmatpush.bf16.msrb.mxu1 %v1523_v44  ;;  %v1447_v43 = vor.u32 %v1917_v33, %v1444_v34  ;;  %v1575_v44 = vor.u32 %v1949_v35, %v1572_v36  ;;  %v2001_v27 = vld [vmem:[#allocation8 + $0x32c] sm:$0xf]  ;;  %v1780_v28 = vld [vmem:[#allocation8 + $0x338] sm:$0xf0]  ;;  %v1655_v33 = vor.u32 %v1969_v25, %v1652_v26 }
  0xd2   :  { %v1783_v34 = vor.u32 %v2001_v27, %v1780_v28  ;;  %v1965_v35 = vld [vmem:[#allocation8 + $0x20c] sm:$0xf]  ;;  %v1636_v36 = vld [vmem:[#allocation8 + $0x218] sm:$0xf0] }
  0xd3   :  { %v1639_v39 = vor.u32 %v1965_v35, %v1636_v36 }
  0xd4   :  { %1169 = vmatpush.bf16.msrb.mxu2 %v1667_v51  ;;  %1182 = vmatpush.bf16.msrb.mxu3 %v1795_v52  ;;  %v1981_v51 = vld [vmem:[#allocation8 + $0x28c] sm:$0xf]  ;;  %v1700_v52 = vld [vmem:[#allocation8 + $0x298] sm:$0xf0] }
  0xd5   :  { %1145 = vmatpush.bf16.msrb.mxu0 %v1379_v61  ;;  %1158 = vmatpush.bf16.msrb.mxu1 %v1507_v62  ;;  %v1941_v61 = vld [vmem:[#allocation8 + $0x14c] sm:$0xf]  ;;  %v1540_v62 = vld [vmem:[#allocation8 + $0x158] sm:$0xf0] }
  0xd6   :  { %v1543_v6 = vor.u32 %v1941_v61, %v1540_v62 }
  0xd8   :  { %1170 = vmatpush.bf16.msrb.mxu2 %v1651_v4  ;;  %1183 = vmatpush.bf16.msrb.mxu3 %v1779_v5  ;;  %v1812_v4 = vld [vmem:[#allocation8 + $0x378] sm:$0xf0]  ;;  %v1415_v5 = vor.u32 %v1909_v59, %v1412_v60 }
  0xd9   :  { %1190 = vmatpush.bf16.msra.mxu0 %v1495_v63  ;;  %1203 = vmatpush.bf16.msra.mxu1 %v1623_v0  ;;  %v1703_v63 = vor.u32 %v1981_v51, %v1700_v52  ;;  %v1831_v0 = vor.u32 %v2013_v53, %v1828_v56  ;;  %v1815_v12 = vor.u32 %v2009_v3, %v1812_v4 }
  0xda   :  { %1146 = vmatmul.bf16.vlgmr.msrb.gmra.mxu0 %v2191_v31  ;;  %1159 = vmatmul.bf16.vlgmr.msrb.gmra.mxu1 %v2193_v32 }
  0xdc   :  { %1171 = vmatpush.bf16.msrb.mxu2 %v1635_v18  ;;  %1184 = vmatpush.bf16.msrb.mxu3 %v1763_v19  ;;  %v1527_v18 = vor.u32 %v1937_v9, %v1524_v10  ;;  %v1901_v19 = vld [vmem:[#allocation8 + $0xc] sm:$0xf] }
  0xdd   :  { %1191 = vmatpush.bf16.msra.mxu0 %v1479_v15  ;;  %1204 = vmatpush.bf16.msra.mxu1 %v1607_v16  ;;  %v2005_v15 = vld [vmem:[#allocation8 + $0x34c] sm:$0xf]  ;;  %v1796_v16 = vld [vmem:[#allocation8 + $0x358] sm:$0xf0] }
  0xdf   :  { %1172 = vmatmul.bf16.vlgmr.msrb.gmra.mxu2 %v2197_v54  ;;  %1185 = vmatmul.bf16.vlgmr.msrb.gmra.mxu3 %v2199_v55 }
  0xe0   :  { %1216 = vmatpush.bf16.msra.mxu2 %v1751_v23  ;;  %1229 = vmatpush.bf16.msra.mxu3 %v1879_v24  ;;  %v1671_v23 = vor.u32 %v1973_v13, %v1668_v14  ;;  %v1799_v24 = vor.u32 %v2005_v15, %v1796_v16 }
  0xe1   :  { %1192 = vmatpush.bf16.msra.mxu0 %v1463_v29  ;;  %1205 = vmatpush.bf16.msra.mxu1 %v1591_v30  ;;  %v1383_v29 = vor.u32 %v1901_v19, %v1380_v20  ;;  %v1511_v30 = vor.u32 %v1933_v21, %v1508_v22 }
  0xe4   :  { %1217 = vmatpush.bf16.msra.mxu2 %v1735_v37  ;;  %1230 = vmatpush.bf16.msra.mxu3 %v1863_v38  ;;  %v1997_v37 = vld [vmem:[#allocation8 + $0x30c] sm:$0xf]  ;;  %v1764_v38 = vld [vmem:[#allocation8 + $0x318] sm:$0xf0] }
  0xe5   :  { %1193 = vmatpush.bf16.msra.mxu0 %v1447_v43  ;;  %1206 = vmatpush.bf16.msra.mxu1 %v1575_v44  ;;  %v1767_v40 = vor.u32 %v1997_v37, %v1764_v38 }
  0xe8   :  { %1218 = vmatpush.bf16.msra.mxu2 %v1719_v49  ;;  %1231 = vmatpush.bf16.msra.mxu3 %v1847_v50 }
  0xe9   :  { %1194 = vmatpush.bf16.msra.mxu0 %v1431_v57  ;;  %1207 = vmatpush.bf16.msra.mxu1 %v1559_v58 }
  0xec   :  { %1219 = vmatpush.bf16.msra.mxu2 %v1703_v63  ;;  %1232 = vmatpush.bf16.msra.mxu3 %v1831_v0 }
  0xed   :  { %1195 = vmatpush.bf16.msra.mxu0 %v1415_v5  ;;  %1208 = vmatpush.bf16.msra.mxu1 %v1543_v6 }
  0xf0   :  { %1220 = vmatpush.bf16.msra.mxu2 %v1687_v11  ;;  %1233 = vmatpush.bf16.msra.mxu3 %v1815_v12 }
  0xf1   :  { %1196 = vmatpush.bf16.msra.mxu0 %v1399_v17  ;;  %1209 = vmatpush.bf16.msra.mxu1 %v1527_v18 }
  0xf4   :  { %1221 = vmatpush.bf16.msra.mxu2 %v1671_v23  ;;  %1234 = vmatpush.bf16.msra.mxu3 %v1799_v24 }
  0xf5   :  { %1197 = vmatpush.bf16.msra.mxu0 %v1383_v29  ;;  %1210 = vmatpush.bf16.msra.mxu1 %v1511_v30 }
  0xf8   :  { %1222 = vmatpush.bf16.msra.mxu2 %v1655_v33  ;;  %1235 = vmatpush.bf16.msra.mxu3 %v1783_v34 }
  0xf9   :  { %1198 = vmatmul.bf16.vlgmr.msra.gmra.mxu0 %v2191_v31  ;;  %1211 = vmatmul.bf16.vlgmr.msra.gmra.mxu1 %v2193_v32 }
  0xfc   :  { %1223 = vmatpush.bf16.msra.mxu2 %v1639_v39  ;;  %1236 = vmatpush.bf16.msra.mxu3 %v1767_v40 }
  0xff   :  { %1224 = vmatmul.bf16.vlgmr.msra.gmra.mxu2 %v2197_v54  ;;  %1237 = vmatmul.bf16.vlgmr.msra.gmra.mxu3 %v2199_v55 }
 0x134   :  { %v1043_v41 = vpop.f32.mrf.mxu0  ;;  %v1056_v42 = vpop.f32.mrf.mxu1 }
 0x135   :  { %v1057_v45 = vadd.f32 %v1056_v42, %v1043_v41 }
 0x13c   :  { %v1045_v43 = vpop.f32.mrf.mxu0  ;;  %v1058_v44 = vpop.f32.mrf.mxu1 }
 0x142   :  { %v1069_v46 = vpop.f32.mrf.mxu2  ;;  %v1082_v47 = vpop.f32.mrf.mxu3 }
 0x143   :  { %v1070_v48 = vadd.f32 %v1069_v46, %v1057_v45 }
 0x144   :  { %v1095_v50 = vpop.f32.mrf.mxu0  ;;  %v1108_v51 = vpop.f32.mrf.mxu1 }
 0x145   :  { %v1083_v49 = vadd.f32 %v1082_v47, %v1070_v48  ;;  %v1109_v55 = vadd.f32 %v1108_v51, %v1095_v50 }
 0x147   :  { %v1242_v31 = vmin.f32 %v1083_v49, 0.0  ;;  %vm1262_vm5 = vcmp.gt.f32.partialorder %v1083_v49, 0.0 }
 0x149   :  { %v1246_v52 = vmul.f32 1.442695, %v1242_v31 }
 0x14a   :  { %v1071_v32 = vpop.f32.mrf.mxu2  ;;  %v1084_v53 = vpop.f32.mrf.mxu3 }
 0x14b   :  { %2042 = vpow2.f32 %v1246_v52 }
 0x14c   :  { %v1097_v56 = vpop.f32.mrf.mxu0  ;;  %v1110_v54 = vpop.f32.mrf.mxu1 }
 0x151   :  { %v2043_v57 = vpop.eup %2042 }
 0x152   :  { %v1880_v58 = vadd.f32 -1.0, %v2043_v57  ;;  %v1121_v59 = vpop.f32.mrf.mxu2  ;;  %v1134_v60 = vpop.f32.mrf.mxu3 }
 0x153   :  { %v1122_v61 = vadd.f32 %v1121_v59, %v1109_v55 }
 0x154   :  { %v1258_v62 = vmul.f32 1.6732632, %v1880_v58 }
 0x155   :  { %v1135_v63 = vadd.f32 %v1134_v60, %v1122_v61 }
 0x156   :  { %v1266_v0 = vsel %vm1262_vm5, %v1083_v49, %v1258_v62 }
 0x157   :  { %v1147_v1 = vpop.f32.mrf.mxu0  ;;  %v1160_v2 = vpop.f32.mrf.mxu1  ;;  %v1270_v3 = vmul.f32 1.050701, %v1266_v0  ;;  %v1243_v4 = vmin.f32 %v1135_v63, 0.0  ;;  %vm1263_vm6 = vcmp.gt.f32.partialorder %v1135_v63, 0.0 }
 0x158   :  { %v1161_v12 = vadd.f32 %v1160_v2, %v1147_v1 }
 0x159   :  { %1274 = vst [vmem:[#allocation9] sm:$0xff] %v1270_v3  ;;  %v1248_v5 = vmul.f32 1.442695, %v1243_v4 }
 0x15a   :  { %v1123_v6 = vpop.f32.mrf.mxu2  ;;  %v1136_v7 = vpop.f32.mrf.mxu3 }
 0x15b   :  { %2044 = vpow2.f32 %v1248_v5 }
 0x15f   :  { %v1149_v8 = vpop.f32.mrf.mxu0  ;;  %v1162_v9 = vpop.f32.mrf.mxu1 }
 0x161   :  { %v2045_v10 = vpop.eup %2044 }
 0x162   :  { %v1881_v11 = vadd.f32 -1.0, %v2045_v10  ;;  %v1173_v13 = vpop.f32.mrf.mxu2  ;;  %v1186_v14 = vpop.f32.mrf.mxu3 }
 0x163   :  { %v1174_v16 = vadd.f32 %v1173_v13, %v1161_v12 }
 0x164   :  { %v1259_v15 = vmul.f32 1.6732632, %v1881_v11 }
 0x165   :  { %v1187_v18 = vadd.f32 %v1186_v14, %v1174_v16 }
 0x166   :  { %v1267_v17 = vsel %vm1263_vm6, %v1135_v63, %v1259_v15 }
 0x167   :  { %v1271_v19 = vmul.f32 1.050701, %v1267_v17  ;;  %v1244_v20 = vmin.f32 %v1187_v18, 0.0  ;;  %vm1264_vm7 = vcmp.gt.f32.partialorder %v1187_v18, 0.0 }
 0x169   :  { %1275 = vst [vmem:[#allocation9 + $0x8] sm:$0xff] %v1271_v19  ;;  %v1250_v21 = vmul.f32 1.442695, %v1244_v20 }
 0x16a   :  { %v1175_v22 = vpop.f32.mrf.mxu2  ;;  %v1188_v23 = vpop.f32.mrf.mxu3 }
 0x16b   :  { %2046 = vpow2.f32 %v1250_v21 }
 0x171   :  { %v2047_v24 = vpop.eup %2046 }
 0x172   :  { %v1882_v25 = vadd.f32 -1.0, %v2047_v24 }
 0x174   :  { %v1260_v28 = vmul.f32 1.6732632, %v1882_v25 }
 0x176   :  { %v1199_v26 = vpop.f32.mrf.mxu0  ;;  %v1212_v27 = vpop.f32.mrf.mxu1  ;;  %v1268_v29 = vsel %vm1264_vm7, %v1187_v18, %v1260_v28 }
 0x177   :  { %v1272_v30 = vmul.f32 1.050701, %v1268_v29  ;;  %v1213_v35 = vadd.f32 %v1212_v27, %v1199_v26 }
 0x179   :  { %1276 = vst [vmem:[#allocation9 + $0x10] sm:$0xff] %v1272_v30 }
 0x17e   :  { %v1201_v33 = vpop.f32.mrf.mxu0  ;;  %v1214_v34 = vpop.f32.mrf.mxu1 }
 0x182   :  { %v1225_v36 = vpop.f32.mrf.mxu2  ;;  %v1238_v37 = vpop.f32.mrf.mxu3 }
 0x183   :  { %v1226_v38 = vadd.f32 %v1225_v36, %v1213_v35 }
 0x185   :  { %v1239_v39 = vadd.f32 %v1238_v37, %v1226_v38 }
 0x187   :  { %v1245_v40 = vmin.f32 %v1239_v39, 0.0  ;;  %vm1265_vm8 = vcmp.gt.f32.partialorder %v1239_v39, 0.0 }
 0x189   :  { %v1252_v41 = vmul.f32 1.442695, %v1245_v40 }
 0x18a   :  { %v1227_v42 = vpop.f32.mrf.mxu2  ;;  %v1240_v43 = vpop.f32.mrf.mxu3 }
 0x18b   :  { %2048 = vpow2.f32 %v1252_v41 }
 0x191   :  { %v2049_v44 = vpop.eup %2048 }
 0x192   :  { %v1883_v45 = vadd.f32 -1.0, %v2049_v44 }
 0x194   :  { %v1261_v46 = vmul.f32 1.6732632, %v1883_v45 }
 0x196   :  { %v1269_v47 = vsel %vm1265_vm8, %v1239_v39, %v1261_v46 }
 0x197   :  { %v1273_v48 = vmul.f32 1.050701, %v1269_v47 }
 0x199   :  { %1277 = vst [vmem:[#allocation9 + $0x18] sm:$0xff] %v1273_v48 }
 0x19a   :  { %1288 = dma.vmem_to_hbm [thread:$0]  %s1284_s2, 512, %s1286_s30, [#allocation5]  }
 0x19b   :  { %2150 = dma.done.wait [#allocation5], 512  }
 0x19c   :  { %2151 = vsyncadd [#allocation5], 4294966784 }
 0x19d   :  { %1293 = vsyncpa [#allocation4], 1 }
 0x19e   :  { %1294 = vsyncpa [#allocation7], 1 }
 0x19f   :  { %1295 = vsyncpa [#allocation5], 1 }

</bundles_post_ra>
